<compile_context>
chip_gen: v5e
topology: v5e:2x2
jax: 0.10.0
libtpu: 0.0.40
codegen_flags: <defaults>
</compile_context>

<pallas_src>
import numpy as np
import jax
import jax.numpy as jnp
from jax.experimental import pallas as pl
from jax.experimental.pallas import tpu as pltpu

# ---- model hyper-parameters (small, consistent with the module) -------------
FIELD_DIMS = (8, 12, 16, 20)      # data['field_dims']
FACTOR_DIM = 8                    # args.embed_dim
MLP_DIMS   = (32, 16)             # args.mlp_dims
FINAL_DIMS = (64, 32)             # final_mlp hidden dims (fixed in the module)

NUM_FIELDS  = len(FIELD_DIMS)
FEATURE_DIM = int(sum(FIELD_DIMS))                       # 56
NUM_PAIRS   = NUM_FIELDS * (NUM_FIELDS - 1) // 2         # 6
INTER_DIM   = FACTOR_DIM * NUM_PAIRS                     # 48
DEEP_IN_DIM = NUM_FIELDS * FACTOR_DIM                    # 32
PAIRS       = [(f, g) for f in range(NUM_FIELDS - 1) for g in range(f + 1, NUM_FIELDS)]
OFFSETS     = (0, *np.cumsum(FIELD_DIMS)[:-1].tolist())  # per-field vocab offsets
VOCAB_PAD   = 64                                         # 56 padded up; multi-hot height / K
GATHER_ROWS = 2 * INTER_DIM + DEEP_IN_DIM + FINAL_DIMS[0]  # 48+48+32+64 = 192


# ---- deterministic parameter init (matches the torch module's xavier init) ---
def _xavier_uniform(key, shape):
    fan_in, fan_out = shape[-2], shape[-1]
    a = float(np.sqrt(6.0 / (fan_in + fan_out)))
    return jax.random.uniform(key, shape, jnp.float32, -a, a)


def init_params(key):
    D = FACTOR_DIM
    keys = jax.random.split(key, 16)
    p = {}
    # FeaturesLinear: (feature_dim, 1) embedding + scalar bias
    p["lin_w"] = _xavier_uniform(keys[0], (FEATURE_DIM, 1))
    p["lin_b"] = jnp.zeros((1, 1), jnp.float32)
    # shared FeaturesEmbedding
    p["emb_w"] = _xavier_uniform(keys[1], (FEATURE_DIM, D))
    # per-field FFM embeddings
    p["ffm_w"] = jnp.stack(
        [_xavier_uniform(keys[2 + f], (FEATURE_DIM, D)) for f in range(NUM_FIELDS)]
    )
    # deep MLP (num_fields*D -> mlp_dims[0] -> mlp_dims[1], ReLU)
    p["w1"] = _xavier_uniform(keys[8], (DEEP_IN_DIM, MLP_DIMS[0]))
    p["b1"] = jnp.zeros((1, MLP_DIMS[0]), jnp.float32)
    p["w2"] = _xavier_uniform(keys[9], (MLP_DIMS[0], MLP_DIMS[1]))
    p["b2"] = jnp.zeros((1, MLP_DIMS[1]), jnp.float32)
    # final MLP: (1 + INTER_DIM + mlp_dims[-1]) -> 64 -> 32 -> 1
    # layer-1 weight stored split (first-order / interactions / deep); identical math.
    p["fw1_first"] = _xavier_uniform(keys[10], (1, FINAL_DIMS[0]))
    p["fw1_inter"] = _xavier_uniform(keys[11], (INTER_DIM, FINAL_DIMS[0]))
    p["fw1_deep"]  = _xavier_uniform(keys[12], (MLP_DIMS[1], FINAL_DIMS[0]))
    p["fb1"] = jnp.zeros((1, FINAL_DIMS[0]), jnp.float32)
    p["fw2"] = _xavier_uniform(keys[13], (FINAL_DIMS[0], FINAL_DIMS[1]))
    p["fb2"] = jnp.zeros((1, FINAL_DIMS[1]), jnp.float32)
    p["fw3"] = _xavier_uniform(keys[14], (FINAL_DIMS[1], 1))
    p["fb3"] = jnp.zeros((1, 1), jnp.float32)
    return p


# ---- one-time host-side packing (call once at model-load time, NOT per forward) ----
def prepare_inference_params(p, use_bf16=True):
    """Pack weights for the transposed (features-on-sublanes) kernel layout.

    wg (192, 64): one fused "gather" LHS so a single MXU matmul against the
      multi-hot produces  [ xa(48) | xb(48) | deep_in(32) | first-order@fw1_first(64) ].
      Fields occupy disjoint vocab columns, so wg @ multihot reproduces the per-field
      embedding gathers exactly.
    bias (64, 8) f32: column-packed tiny vectors
      col0 fb1(+lin_b folded), col1 b1, col2 b2, col3 fb2, col4 fw3, col5 fb3.
    """
    D = FACTOR_DIM
    emb_w = np.asarray(p["emb_w"])
    ffm_w = np.asarray(p["ffm_w"])
    lin_w = np.asarray(p["lin_w"])
    lin_b = float(np.asarray(p["lin_b"])[0, 0])
    fw1_first = np.asarray(p["fw1_first"])                # (1, 64)

    wg = np.zeros((GATHER_ROWS, VOCAB_PAD), np.float32)
    for pi, (f, g) in enumerate(PAIRS):
        sg, eg = OFFSETS[g], OFFSETS[g] + FIELD_DIMS[g]
        wg[pi * D:(pi + 1) * D, sg:eg] = ffm_w[f][sg:eg].T                 # xa
        sf, ef = OFFSETS[f], OFFSETS[f] + FIELD_DIMS[f]
        wg[INTER_DIM + pi * D:INTER_DIM + (pi + 1) * D, sf:ef] = ffm_w[g][sf:ef].T  # xb
    for j in range(NUM_FIELDS):
        s, e = OFFSETS[j], OFFSETS[j] + FIELD_DIMS[j]
        wg[2 * INTER_DIM + j * D:2 * INTER_DIM + (j + 1) * D, s:e] = emb_w[s:e].T   # deep
    lin_row = np.zeros((1, VOCAB_PAD), np.float32)
    lin_row[0, :FEATURE_DIM] = lin_w[:, 0]
    # first-order contribution to final layer 1, folded directly into the gather:
    wg[2 * INTER_DIM + DEEP_IN_DIM:, :] = fw1_first.T @ lin_row           # (64, 64)

    w1t  = np.asarray(p["w1"]).T                                          # (32, 32)
    w2t  = np.asarray(p["w2"]).T                                          # (16, 32)
    fw1t = np.concatenate([np.asarray(p["fw1_inter"]),
                           np.asarray(p["fw1_deep"])], axis=0).T          # (64, 64)
    fw2t = np.asarray(p["fw2"]).T                                         # (32, 64)

    bias = np.zeros((VOCAB_PAD, 8), np.float32)
    fb1_eff = np.asarray(p["fb1"])[0] + lin_b * fw1_first[0]              # FeaturesLinear bias folded
    bias[:FINAL_DIMS[0], 0] = fb1_eff
    bias[:MLP_DIMS[0], 1] = np.asarray(p["b1"])[0]
    bias[:MLP_DIMS[1], 2] = np.asarray(p["b2"])[0]
    bias[:FINAL_DIMS[1], 3] = np.asarray(p["fb2"])[0]
    bias[:FINAL_DIMS[1], 4] = np.asarray(p["fw3"])[:, 0]
    bias[0, 5] = float(np.asarray(p["fb3"])[0, 0])

    cdt = jnp.bfloat16 if use_bf16 else jnp.float32   # matmul operand dtype (f32 accumulate)
    return {
        "wg":   jnp.asarray(wg,   cdt),
        "w1t":  jnp.asarray(w1t,  cdt),
        "w2t":  jnp.asarray(w2t,  cdt),
        "fw1t": jnp.asarray(fw1t, cdt),
        "fw2t": jnp.asarray(fw2t, cdt),
        "bias": jnp.asarray(bias, jnp.float32),
    }


# ---- Pallas kernel (one batch tile per grid step; batch lives on lanes) -------
def deepffm_kernel(x_ref, wg_ref, w1_ref, w2_ref, fw1_ref, fw2_ref, bias_ref, out_ref):
    tb = x_ref.shape[1]
    cdt = wg_ref.dtype                               # bf16 (fast path) or f32

    # multi-hot (VOCAB_PAD, tb): vocab on sublanes, batch on lanes.
    # ids arrive already field-offset; fields occupy disjoint vocab rows.
    sub = jax.lax.broadcasted_iota(jnp.int32, (VOCAB_PAD, tb), 0)
    ids = x_ref[...]                                 # (NUM_FIELDS, tb) int32
    m = jnp.zeros((VOCAB_PAD, tb), jnp.float32)
    for f in range(NUM_FIELDS):
        m = m + (sub == ids[f:f + 1, :]).astype(jnp.float32)
    m = m.astype(cdt)                                # 0/1 -> exact in bf16

    # one fused MXU matmul: gathers (xa | xb | deep_in) + first-order@fw1_first
    r = jnp.dot(wg_ref[...], m, preferred_element_type=jnp.float32)       # (192, tb) f32
    xa      = r[0:INTER_DIM, :]                                           # (48, tb)
    xb      = r[INTER_DIM:2 * INTER_DIM, :]                               # (48, tb)
    deep_in = r[2 * INTER_DIM:2 * INTER_DIM + DEEP_IN_DIM, :]             # (32, tb)
    z_first = r[2 * INTER_DIM + DEEP_IN_DIM:, :]                          # (64, tb)

    inter = xa * xb                                                        # (48, tb) VPU

    # deep branch: 2-layer MLP with ReLU (dropout/BN identity in eval)
    b1 = bias_ref[0:MLP_DIMS[0], 1:2]
    b2 = bias_ref[0:MLP_DIMS[1], 2:3]
    h = jnp.dot(w1_ref[...], deep_in.astype(cdt), preferred_element_type=jnp.float32)
    h = jnp.maximum(h + b1, 0.0)
    d = jnp.dot(w2_ref[...], h.astype(cdt), preferred_element_type=jnp.float32)
    d = jnp.maximum(d + b2, 0.0)                                           # (16, tb)

    # final MLP layer 1: single K=64 dot over [inter(48) | deep_out(16)]
    slab = jnp.concatenate([inter, d], axis=0).astype(cdt)                 # (64, tb)
    fb1 = bias_ref[:, 0:1]                                                 # (64, 1)
    z = jnp.dot(fw1_ref[...], slab, preferred_element_type=jnp.float32)
    z = jnp.maximum(z + z_first + fb1, 0.0)                                # (64, tb)

    # final MLP layer 2
    fb2 = bias_ref[0:FINAL_DIMS[1], 3:4]
    z = jnp.dot(fw2_ref[...], z.astype(cdt), preferred_element_type=jnp.float32)
    z = jnp.maximum(z + fb2, 0.0)                                          # (32, tb)

    # final (32 -> 1): VPU multiply + sublane reduce -> lane-dense (1, tb) store
    fw3 = bias_ref[0:FINAL_DIMS[1], 4:5]
    fb3 = bias_ref[0:1, 5:6]
    out_ref[...] = jnp.sum(z * fw3, axis=0, keepdims=True) + fb3


# ---- wrapper (jit-able; packed weights are passed in, not rebuilt per call) ----
def _round_up(v, m):
    return ((v + m - 1) // m) * m


def _pick_tile(B, tile_b, min_steps=4):
    # Keep >= min_steps grid steps where possible so the "parallel" batch axis
    # shards across both v7x TensorCores (v5e/v6e have 1 TC, unaffected).
    t = min(int(tile_b), _round_up(pl.cdiv(B, min_steps), 128))
    return max(128, _round_up(t, 128))


def deepffm_forward(packed, x, tile_b=512):
    """x: (B, NUM_FIELDS) int32 field-local categorical indices -> (B,) f32.

    `packed` comes from prepare_inference_params (call once at model load).
    Per-tile VMEM is ~1.5 KB/sample, so tile_b up to 2048 stays far under the
    scoped VMEM defaults on v5e/v6e/v7x; tile_b=512+ amortizes the ~0.35 us
    per-grid-step overhead.
    """
    B = x.shape[0]
    tile = _pick_tile(B, tile_b)
    b_pad = pl.cdiv(B, tile) * tile

    offs = jnp.asarray(OFFSETS, jnp.int32)[None, :]
    xt = (x + offs).T                                  # (NUM_FIELDS, B), ids pre-offset
    if b_pad != B:
        xt = jnp.pad(xt, ((0, 0), (0, b_pad - B)))     # pad ids are 0 (valid row); discarded
    grid = (b_pad // tile,)

    weights = (packed["wg"], packed["w1t"], packed["w2t"],
               packed["fw1t"], packed["fw2t"], packed["bias"])

    def _resident(arr):   # full-shape block, same index every step -> DMA'd once
        return pl.BlockSpec(arr.shape, lambda i: (0, 0))

    in_specs = [pl.BlockSpec((NUM_FIELDS, tile), lambda i: (0, i))]
    in_specs += [_resident(w) for w in weights]

    out = pl.pallas_call(
        deepffm_kernel,
        out_shape=jax.ShapeDtypeStruct((1, b_pad), jnp.float32),
        grid=grid,
        in_specs=in_specs,
        out_specs=pl.BlockSpec((1, tile), lambda i: (0, i)),   # lane-dense output block
        compiler_params=pltpu.CompilerParams(dimension_semantics=("parallel",)),
    )(xt, *weights)
    return out[0, :B]                                  # (B,)


# ---- pure-JAX reference for a correctness check ------------------------------
def deepffm_reference(params, x):
    B, F = x.shape
    D = FACTOR_DIM
    offsets = jnp.asarray(OFFSETS, jnp.int32)
    x_ffm = x + offsets[None, :]
    first = jnp.sum(jnp.take(params["lin_w"][:, 0], x_ffm, axis=0), axis=1) + params["lin_b"][0, 0]
    deep_in = jnp.take(params["emb_w"], x_ffm, axis=0).reshape(B, F * D)
    h = jax.nn.relu(deep_in @ params["w1"] + params["b1"])
    deep_out = jax.nn.relu(h @ params["w2"] + params["b2"])
    xv = [jnp.take(params["ffm_w"][f], x_ffm, axis=0) for f in range(F)]
    inter = jnp.concatenate([xv[f][:, g, :] * xv[g][:, f, :] for (f, g) in PAIRS], axis=1)
    fw1 = jnp.concatenate([params["fw1_first"], params["fw1_inter"], params["fw1_deep"]], axis=0)
    combined = jnp.concatenate([first[:, None], inter, deep_out], axis=1)
    z = jax.nn.relu(combined @ fw1 + params["fb1"])
    z = jax.nn.relu(z @ params["fw2"] + params["fb2"])
    return (z @ params["fw3"] + params["fb3"])[:, 0]


if __name__ == "__main__":
    key = jax.random.PRNGKey(0)
    pkey, xkey = jax.random.split(key)
    params = init_params(pkey)

    B = 256                                            # 2 grid steps at tile=128
    xkeys = jax.random.split(xkey, NUM_FIELDS)
    x = jnp.stack(
        [jax.random.randint(xkeys[f], (B,), 0, FIELD_DIMS[f], jnp.int32) for f in range(NUM_FIELDS)],
        axis=1,
    )  # (B, num_fields) int32

    # pack once at "model load" time (hoisted out of the jitted forward)
    packed_bf16 = prepare_inference_params(params, use_bf16=True)
    packed_f32  = prepare_inference_params(params, use_bf16=False)

    fwd = jax.jit(deepffm_forward, static_argnames=("tile_b",))

    y_bf16 = fwd(packed_bf16, x, tile_b=512)           # fast path: bf16 operands, f32 accum
    jax.block_until_ready(y_bf16)
    y_f32 = fwd(packed_f32, x, tile_b=512)             # f32 path for a tight correctness check
    jax.block_until_ready(y_f32)

    with jax.default_matmul_precision("highest"):
        y_ref = deepffm_reference(params, x)
    y_ref = np.asarray(jax.block_until_ready(y_ref))

    assert y_bf16.shape == (B,)
    assert np.allclose(np.asarray(y_f32), y_ref, atol=1e-4, rtol=1e-4), "f32 kernel mismatch"
    assert np.allclose(np.asarray(y_bf16), y_ref, atol=5e-2, rtol=5e-2), "bf16 kernel mismatch"
    print("KERNEL_OK")
</pallas_src>

<mosaic_0001>
module attributes {stable_mosaic.version = 11 : i64} {
  func.func @deepffm_kernel(%arg0: i32, %arg1: memref<4x128xi32, #tpu.memory_space<vmem>>, %arg2: memref<192x64xbf16, #tpu.memory_space<vmem>>, %arg3: memref<32x32xbf16, #tpu.memory_space<vmem>>, %arg4: memref<16x32xbf16, #tpu.memory_space<vmem>>, %arg5: memref<64x64xbf16, #tpu.memory_space<vmem>>, %arg6: memref<32x64xbf16, #tpu.memory_space<vmem>>, %arg7: memref<64x8xf32, #tpu.memory_space<vmem>>, %arg8: memref<1x128xf32, #tpu.memory_space<vmem>>) attributes {dimension_semantics = [#tpu.dimension_semantics<parallel>], iteration_bounds = array<i64: 2>, scalar_prefetch = 0 : i64, scratch_operands = 0 : i64, tpu.core_type = #tpu.core_type<tc>, window_params = [{transform_indices = @transform_0, window_bounds = array<i64: 4, 128>}, {pipeline_mode = #tpu.pipeline_mode<synchronous>, transform_indices = @transform_1, window_bounds = array<i64: 192, 64>}, {pipeline_mode = #tpu.pipeline_mode<synchronous>, transform_indices = @transform_2, window_bounds = array<i64: 32, 32>}, {pipeline_mode = #tpu.pipeline_mode<synchronous>, transform_indices = @transform_3, window_bounds = array<i64: 16, 32>}, {pipeline_mode = #tpu.pipeline_mode<synchronous>, transform_indices = @transform_4, window_bounds = array<i64: 64, 64>}, {pipeline_mode = #tpu.pipeline_mode<synchronous>, transform_indices = @transform_5, window_bounds = array<i64: 32, 64>}, {pipeline_mode = #tpu.pipeline_mode<synchronous>, transform_indices = @transform_6, window_bounds = array<i64: 64, 8>}, {transform_indices = @transform_7, window_bounds = array<i64: 1, 128>}]} {
    %0 = tpu.iota {dimensions = array<i32: 0>} : vector<64x128xi32>
    %c0 = arith.constant 0 : index
    %c0_0 = arith.constant 0 : index
    %1 = vector.load %arg1[%c0, %c0_0] : memref<4x128xi32, #tpu.memory_space<vmem>>, vector<4x128xi32>
    %cst = arith.constant 0.000000e+00 : f32
    %2 = vector.broadcast %cst : f32 to vector<64x128xf32>
    %3 = vector.extract_strided_slice %1 {offsets = [0, 0], sizes = [1, 128], strides = [1, 1]} : vector<4x128xi32> to vector<1x128xi32>
    %4 = vector.broadcast %3 : vector<1x128xi32> to vector<64x128xi32>
    %5 = arith.cmpi eq, %0, %4 : vector<64x128xi32>
    %6 = arith.extui %5 : vector<64x128xi1> to vector<64x128xi32>
    %7 = arith.sitofp %6 : vector<64x128xi32> to vector<64x128xf32>
    %8 = arith.addf %2, %7 : vector<64x128xf32>
    %9 = vector.extract_strided_slice %1 {offsets = [1, 0], sizes = [1, 128], strides = [1, 1]} : vector<4x128xi32> to vector<1x128xi32>
    %10 = vector.broadcast %9 : vector<1x128xi32> to vector<64x128xi32>
    %11 = arith.cmpi eq, %0, %10 : vector<64x128xi32>
    %12 = arith.extui %11 : vector<64x128xi1> to vector<64x128xi32>
    %13 = arith.sitofp %12 : vector<64x128xi32> to vector<64x128xf32>
    %14 = arith.addf %8, %13 : vector<64x128xf32>
    %15 = vector.extract_strided_slice %1 {offsets = [2, 0], sizes = [1, 128], strides = [1, 1]} : vector<4x128xi32> to vector<1x128xi32>
    %16 = vector.broadcast %15 : vector<1x128xi32> to vector<64x128xi32>
    %17 = arith.cmpi eq, %0, %16 : vector<64x128xi32>
    %18 = arith.extui %17 : vector<64x128xi1> to vector<64x128xi32>
    %19 = arith.sitofp %18 : vector<64x128xi32> to vector<64x128xf32>
    %20 = arith.addf %14, %19 : vector<64x128xf32>
    %21 = vector.extract_strided_slice %1 {offsets = [3, 0], sizes = [1, 128], strides = [1, 1]} : vector<4x128xi32> to vector<1x128xi32>
    %22 = vector.broadcast %21 : vector<1x128xi32> to vector<64x128xi32>
    %23 = arith.cmpi eq, %0, %22 : vector<64x128xi32>
    %24 = arith.extui %23 : vector<64x128xi1> to vector<64x128xi32>
    %25 = arith.sitofp %24 : vector<64x128xi32> to vector<64x128xf32>
    %26 = arith.addf %20, %25 : vector<64x128xf32>
    %27 = arith.truncf %26 : vector<64x128xf32> to vector<64x128xbf16>
    %c0_1 = arith.constant 0 : index
    %c0_2 = arith.constant 0 : index
    %28 = vector.load %arg2[%c0_1, %c0_2] : memref<192x64xbf16, #tpu.memory_space<vmem>>, vector<192x64xbf16>
    %cst_3 = arith.constant dense<0.000000e+00> : vector<192x128xf32>
    %29 = tpu.matmul %28, %27, %cst_3 {dimension_numbers = #tpu.dot_dimension_numbers<[1], [0], [0], [1], [0, 0, 1, 1], [], []>} : vector<192x64xbf16>, vector<64x128xbf16>, vector<192x128xf32> -> vector<192x128xf32>
    %30 = vector.extract_strided_slice %29 {offsets = [0, 0], sizes = [48, 128], strides = [1, 1]} : vector<192x128xf32> to vector<48x128xf32>
    %31 = vector.extract_strided_slice %29 {offsets = [48, 0], sizes = [48, 128], strides = [1, 1]} : vector<192x128xf32> to vector<48x128xf32>
    %32 = vector.extract_strided_slice %29 {offsets = [96, 0], sizes = [32, 128], strides = [1, 1]} : vector<192x128xf32> to vector<32x128xf32>
    %33 = vector.extract_strided_slice %29 {offsets = [128, 0], sizes = [64, 128], strides = [1, 1]} : vector<192x128xf32> to vector<64x128xf32>
    %34 = arith.mulf %30, %31 : vector<48x128xf32>
    %c0_4 = arith.constant 0 : index
    %c1 = arith.constant 1 : index
    %35 = vector.load %arg7[%c0_4, %c1] : memref<64x8xf32, #tpu.memory_space<vmem>>, vector<32x1xf32>
    %c0_5 = arith.constant 0 : index
    %c2 = arith.constant 2 : index
    %36 = vector.load %arg7[%c0_5, %c2] : memref<64x8xf32, #tpu.memory_space<vmem>>, vector<16x1xf32>
    %c0_6 = arith.constant 0 : index
    %c0_7 = arith.constant 0 : index
    %37 = vector.load %arg3[%c0_6, %c0_7] : memref<32x32xbf16, #tpu.memory_space<vmem>>, vector<32x32xbf16>
    %38 = arith.truncf %32 : vector<32x128xf32> to vector<32x128xbf16>
    %cst_8 = arith.constant dense<0.000000e+00> : vector<32x128xf32>
    %39 = tpu.matmul %37, %38, %cst_8 {dimension_numbers = #tpu.dot_dimension_numbers<[1], [0], [0], [1], [0, 0, 1, 1], [], []>} : vector<32x32xbf16>, vector<32x128xbf16>, vector<32x128xf32> -> vector<32x128xf32>
    %40 = vector.broadcast %35 : vector<32x1xf32> to vector<32x128xf32>
    %41 = arith.addf %39, %40 : vector<32x128xf32>
    %cst_9 = arith.constant 0.000000e+00 : f32
    %42 = vector.broadcast %cst_9 : f32 to vector<32x128xf32>
    %43 = arith.maximumf %41, %42 : vector<32x128xf32>
    %c0_10 = arith.constant 0 : index
    %c0_11 = arith.constant 0 : index
    %44 = vector.load %arg4[%c0_10, %c0_11] : memref<16x32xbf16, #tpu.memory_space<vmem>>, vector<16x32xbf16>
    %45 = arith.truncf %43 : vector<32x128xf32> to vector<32x128xbf16>
    %cst_12 = arith.constant dense<0.000000e+00> : vector<16x128xf32>
    %46 = tpu.matmul %44, %45, %cst_12 {dimension_numbers = #tpu.dot_dimension_numbers<[1], [0], [0], [1], [0, 0, 1, 1], [], []>} : vector<16x32xbf16>, vector<32x128xbf16>, vector<16x128xf32> -> vector<16x128xf32>
    %47 = vector.broadcast %36 : vector<16x1xf32> to vector<16x128xf32>
    %48 = arith.addf %46, %47 : vector<16x128xf32>
    %cst_13 = arith.constant 0.000000e+00 : f32
    %49 = vector.broadcast %cst_13 : f32 to vector<16x128xf32>
    %50 = arith.maximumf %48, %49 : vector<16x128xf32>
    %51 = tpu.concatenate %34, %50 in 0 : vector<48x128xf32>, vector<16x128xf32> -> vector<64x128xf32>
    %52 = arith.truncf %51 : vector<64x128xf32> to vector<64x128xbf16>
    %c0_14 = arith.constant 0 : index
    %c0_15 = arith.constant 0 : index
    %53 = vector.load %arg7[%c0_14, %c0_15] : memref<64x8xf32, #tpu.memory_space<vmem>>, vector<64x1xf32>
    %c0_16 = arith.constant 0 : index
    %c0_17 = arith.constant 0 : index
    %54 = vector.load %arg5[%c0_16, %c0_17] : memref<64x64xbf16, #tpu.memory_space<vmem>>, vector<64x64xbf16>
    %cst_18 = arith.constant dense<0.000000e+00> : vector<64x128xf32>
    %55 = tpu.matmul %54, %52, %cst_18 {dimension_numbers = #tpu.dot_dimension_numbers<[1], [0], [0], [1], [0, 0, 1, 1], [], []>} : vector<64x64xbf16>, vector<64x128xbf16>, vector<64x128xf32> -> vector<64x128xf32>
    %56 = arith.addf %55, %33 : vector<64x128xf32>
    %57 = vector.broadcast %53 : vector<64x1xf32> to vector<64x128xf32>
    %58 = arith.addf %56, %57 : vector<64x128xf32>
    %cst_19 = arith.constant 0.000000e+00 : f32
    %59 = vector.broadcast %cst_19 : f32 to vector<64x128xf32>
    %60 = arith.maximumf %58, %59 : vector<64x128xf32>
    %c0_20 = arith.constant 0 : index
    %c3 = arith.constant 3 : index
    %61 = vector.load %arg7[%c0_20, %c3] : memref<64x8xf32, #tpu.memory_space<vmem>>, vector<32x1xf32>
    %c0_21 = arith.constant 0 : index
    %c0_22 = arith.constant 0 : index
    %62 = vector.load %arg6[%c0_21, %c0_22] : memref<32x64xbf16, #tpu.memory_space<vmem>>, vector<32x64xbf16>
    %63 = arith.truncf %60 : vector<64x128xf32> to vector<64x128xbf16>
    %cst_23 = arith.constant dense<0.000000e+00> : vector<32x128xf32>
    %64 = tpu.matmul %62, %63, %cst_23 {dimension_numbers = #tpu.dot_dimension_numbers<[1], [0], [0], [1], [0, 0, 1, 1], [], []>} : vector<32x64xbf16>, vector<64x128xbf16>, vector<32x128xf32> -> vector<32x128xf32>
    %65 = vector.broadcast %61 : vector<32x1xf32> to vector<32x128xf32>
    %66 = arith.addf %64, %65 : vector<32x128xf32>
    %cst_24 = arith.constant 0.000000e+00 : f32
    %67 = vector.broadcast %cst_24 : f32 to vector<32x128xf32>
    %68 = arith.maximumf %66, %67 : vector<32x128xf32>
    %c0_25 = arith.constant 0 : index
    %c4 = arith.constant 4 : index
    %69 = vector.load %arg7[%c0_25, %c4] : memref<64x8xf32, #tpu.memory_space<vmem>>, vector<32x1xf32>
    %c0_26 = arith.constant 0 : index
    %c5 = arith.constant 5 : index
    %70 = vector.load %arg7[%c0_26, %c5] : memref<64x8xf32, #tpu.memory_space<vmem>>, vector<1x1xf32>
    %71 = vector.broadcast %69 : vector<32x1xf32> to vector<32x128xf32>
    %72 = arith.mulf %68, %71 : vector<32x128xf32>
    %cst_27 = arith.constant dense<0.000000e+00> : vector<128xf32>
    %73 = vector.multi_reduction <add>, %72, %cst_27 [0] : vector<32x128xf32> to vector<128xf32>
    %74 = vector.shape_cast %73 : vector<128xf32> to vector<1x128xf32>
    %75 = vector.broadcast %70 : vector<1x1xf32> to vector<1x128xf32>
    %76 = arith.addf %74, %75 : vector<1x128xf32>
    %c0_28 = arith.constant 0 : index
    %c0_29 = arith.constant 0 : index
    %77 = vector.load %arg8[%c0_28, %c0_29] : memref<1x128xf32, #tpu.memory_space<vmem>>, vector<1x128xf32>
    tpu.vector_store %arg8[%c0_28, %c0_29], %76 {strides = array<i32>} : memref<1x128xf32, #tpu.memory_space<vmem>>, vector<1x128xf32>,
    return
  }
  func.func @transform_0(%arg0: i32) -> (i32, i32) {
    %c0_i32 = arith.constant 0 : i32
    %c0_i32_0 = arith.constant 0 : i32
    return %c0_i32, %arg0 : i32, i32
  }
  func.func @transform_1(%arg0: i32) -> (i32, i32) {
    %c0_i32 = arith.constant 0 : i32
    %c0_i32_0 = arith.constant 0 : i32
    %c0_i32_1 = arith.constant 0 : i32
    return %c0_i32, %c0_i32_0 : i32, i32
  }
  func.func @transform_2(%arg0: i32) -> (i32, i32) {
    %c0_i32 = arith.constant 0 : i32
    %c0_i32_0 = arith.constant 0 : i32
    %c0_i32_1 = arith.constant 0 : i32
    return %c0_i32, %c0_i32_0 : i32, i32
  }
  func.func @transform_3(%arg0: i32) -> (i32, i32) {
    %c0_i32 = arith.constant 0 : i32
    %c0_i32_0 = arith.constant 0 : i32
    %c0_i32_1 = arith.constant 0 : i32
    return %c0_i32, %c0_i32_0 : i32, i32
  }
  func.func @transform_4(%arg0: i32) -> (i32, i32) {
    %c0_i32 = arith.constant 0 : i32
    %c0_i32_0 = arith.constant 0 : i32
    %c0_i32_1 = arith.constant 0 : i32
    return %c0_i32, %c0_i32_0 : i32, i32
  }
  func.func @transform_5(%arg0: i32) -> (i32, i32) {
    %c0_i32 = arith.constant 0 : i32
    %c0_i32_0 = arith.constant 0 : i32
    %c0_i32_1 = arith.constant 0 : i32
    return %c0_i32, %c0_i32_0 : i32, i32
  }
  func.func @transform_6(%arg0: i32) -> (i32, i32) {
    %c0_i32 = arith.constant 0 : i32
    %c0_i32_0 = arith.constant 0 : i32
    %c0_i32_1 = arith.constant 0 : i32
    return %c0_i32, %c0_i32_0 : i32, i32
  }
  func.func @transform_7(%arg0: i32) -> (i32, i32) {
    %c0_i32 = arith.constant 0 : i32
    %c0_i32_0 = arith.constant 0 : i32
    return %c0_i32, %arg0 : i32, i32
  }
}

</mosaic_0001>

<bundles_post_ra>
// kernel: deepffm_forward.1
= control target key start
LH: loop header
LB: loop body
LE: loop exit
PB: predicated region body
PF: predicated region fallthrough
CT: control target
= control target key end

     0   :  { %12 = vsyncpa [#allocation3], 0  ;;  %s1708_s0 = inlined_call_operand.vmem [shape: s32[4,256], index: 0, kind: input, shape index: {}]   ;;  %s1709_s1 = inlined_call_operand.vmem [shape: bf16[192,64], index: 1, kind: input, shape index: {}]   ;;  %s1710_s2 = inlined_call_operand.vmem [shape: bf16[32,32], index: 2, kind: input, shape index: {}]   ;;  %s1711_s3 = inlined_call_operand.vmem [shape: bf16[16,32], index: 3, kind: input, shape index: {}]   ;;  %s1712_s4 = inlined_call_operand.vmem [shape: bf16[64,64], index: 4, kind: input, shape index: {}]   ;;  %s1713_s5 = inlined_call_operand.vmem [shape: bf16[32,64], index: 5, kind: input, shape index: {}]   ;;  %s1714_s6 = inlined_call_operand.vmem [shape: f32[64,8], index: 6, kind: input, shape index: {}]   ;;  %s1715_s7 = inlined_call_operand.hbm [shape: f32[1,256], index: 7, kind: output, shape index: {}]  }
   0x1   :  { %14 = vsyncpa [#allocation3 + $0x1], 0  ;;  %s1371_s24 = smov 0   ;;  %s1373_s25 = smov 0  }
   0x2   :  { %s1375_s26 = smov 0   ;;  %s1377_s27 = smov 0  }
   0x3 LB: > { %s1392_s28 = sadd.s32 4294967295, %s1322_s27   ;;  %s1027_s29 = sadd.s32 4294967294, %s1322_s27   ;;  %s1322_s27 = sphi %s1377_s27, %s1721_s27   ;;  %s1318_s26 = sphi %s1375_s26, %s1720_s26   ;;  %s1314_s25 = sphi %s1373_s25, %s1719_s25   ;;  %s1310_s24 = sphi %s1371_s24, %s1718_s24  }
   0x4   : > { %s1396_s30 = sadd.s32 1, %s1322_s27   ;;  %s179_s8 = sadd.s32 1, %s1318_s26 }
   0x5   : > { %s176_s9 = ssub.s32 %s1322_s27, %s1396_s30  ;;  %p189_p0 = scmp.ne.s32.totalorder %s1318_s26, %s1314_s25 }
   0x6   : > { %p177_p1 = scmp.eq.s32.totalorder %s176_s9, 0  ;;  %p190_p2 = scmp.eq.s32.totalorder %s1392_s28, 1 }
   0x7   : > { %p195_p3 = scmp.ne.s32.totalorder %s1314_s25, %s1310_s24  ;;  %p196_p4 = scmp.eq.s32.totalorder %s1027_s29, 1 }
   0x8   : > { %s1407_s10 = scalar_select %p177_p1, %s1318_s26, %s179_s8  }
   0x9   : > { %p1409_p5 = por %p190_p2, %p189_p0  ;;  %p1413_p6 = por %p196_p4, %p195_p3 }
   0xa   : > { %p1030_p7 = scmp.ge.s32.totalorder %s1322_s27, 1  ;;  %p239_p8 = scmp.lt.s32.totalorder %s1322_s27, 3 }
   0xc   : > { %p240_p9 = pnand %p1030_p7, %p239_p8 }
   0xd   : > { %p269_p10 = scmp.lt.s32.totalorder (!%p240_p9), %s1392_s28, 1  ;;  %s267_s22 = sand.u32 (!%p240_p9), 1, %s1314_s25  }
   0xe   : > { %243 = sbr.rel (%p240_p9) target bundleno = 932 (0x3a4), region = 48  ;;  %s968_s8 = scalar_lea.hbm (!%p240_p9), %s1715_s7, %s1392_s28 }
   0xf   : > { %s268_s9 = scalar_lea.vmem (!%p240_p9), [#allocation2], %s267_s22  ;;  %s960_s15 = scalar_lea.sflag (!%p240_p9), [#allocation3], %s267_s22 }
  0x10   : > { %s1280_s19 = scalar_lea.hbm (!%p240_p9), %s1715_s7, 2 }
  0x13   : > { %v274_v0 = vlaneseq  ;;  %s270_s13 = scalar_select %p269_p10, %s1392_s28, 1  ;;  %v1324_v14 = vmov 0.0  }
  0x15   : > { %v1421_v1 = vshrl.u32 %v274_v0, 7  ;;  %s1031_s14 = sshll.u32 %s270_s13, 2  ;;  %s970_s13 = sshll.u32 %s268_s9, 4  ;;  %s971_s13 = int_to_ptr.vmem [resolvable:$true] %s970_s13 }
  0x16   : > { %s272_s17 = scalar_lea.vmem %s1708_s0, %s1031_s14  ;;  %s972_s14 = sshll.u32 %s968_s8, 4  ;;  %s973_s14 = int_to_ptr.hbm [resolvable:$true] %s972_s14 }
  0x17   : > { %v281_v2 = vadd.s32 48, %v1421_v1  ;;  %v282_v3 = vadd.s32 56, %v1421_v1  ;;  %v283_v4 = vld [vmem:[%s272_s17] sm:$0xf]  ;;  %v279_v5 = vadd.s32 32, %v1421_v1  ;;  %v280_v9 = vadd.s32 40, %v1421_v1 }
  0x18   : > { %v1429_v6 = vperm.slane %v283_v4, 0  ;;  %v1431_v7 = vperm.slane %v283_v4, 1  ;;  %v1433_v8 = vperm.slane %v283_v4, 2  ;;  %v1436_v10 = vperm.slane %v283_v4, 3  ;;  %s1274_s16 = sshra.s32 %s973_s14, 4  ;;  %s1275_s16 = int_to_ptr.hbm [resolvable:$true] %s1274_s16 }
  0x19   : > { %v1439_v11 = vadd.s32 16, %v1421_v1  ;;  %v1442_v12 = vadd.s32 24, %v1421_v1  ;;  %v1445_v13 = vadd.s32 8, %v1421_v1  ;;  %s1276_s17 = scalar_lea.hbm %s1275_s16, 1  ;;  %p1281_p0 = scmp.lt.s32.totalorder %s1275_s16, %s1715_s7 }
  0x1a   : > { %vm291_vm0 = vcmp.eq.s32.totalorder %v281_v2, %v1429_v6  ;;  %vm292_vm1 = vcmp.eq.s32.totalorder %v282_v3, %v1429_v6  ;;  %vm324_vm2 = vcmp.eq.s32.totalorder %v281_v2, %v1431_v7  ;;  %vm325_vm3 = vcmp.eq.s32.totalorder %v282_v3, %v1431_v7  ;;  %p1277_p11 = scmp.ne.s32.totalorder %s1275_s16, %s1276_s17  ;;  %p1282_p1 = scmp.lt.s32.totalorder %s1280_s19, %s1276_s17 }
  0x1b   : > { %v1038_v15 = vsel %vm291_vm0, 1.0, %v1324_v14  ;;  %v1039_v16 = vsel %vm292_vm1, 1.0, %v1324_v14  ;;  %v1046_v17 = vsel %vm324_vm2, 1.0, %v1324_v14  ;;  %v1047_v18 = vsel %vm325_vm3, 1.0, %v1324_v14 }
  0x1c   : > { %v348_v19 = vadd.f32 %v1046_v17, %v1038_v15  ;;  %v349_v20 = vadd.f32 %v1047_v18, %v1039_v16  ;;  %vm357_vm4 = vcmp.eq.s32.totalorder %v281_v2, %v1433_v8  ;;  %vm358_vm5 = vcmp.eq.s32.totalorder %v282_v3, %v1433_v8  ;;  %v1177_v15 = vld [vmem:[%s1709_s1 + $0x30] sm:$0xff]  ;;  %v1546_v18 = vld [vmem:[%s1714_s6] sm:$0xff]  ;;  %p1278_p12 = pnand %p1277_p11, %p1409_p5  ;;  %p1283_p2 = por %p1282_p1, %p1281_p0 }
  0x1d   : > { %v1054_v21 = vsel %vm357_vm4, 1.0, %v1324_v14  ;;  %v1055_v22 = vsel %vm358_vm5, 1.0, %v1324_v14  ;;  %vm390_vm6 = vcmp.eq.s32.totalorder %v281_v2, %v1436_v10  ;;  %vm391_vm7 = vcmp.eq.s32.totalorder %v282_v3, %v1436_v10 }
  0x1e   : > { %v381_v23 = vadd.f32 %v1054_v21, %v348_v19  ;;  %v382_v24 = vadd.f32 %v1055_v22, %v349_v20  ;;  %v1062_v25 = vsel %vm390_vm6, 1.0, %v1324_v14  ;;  %v1063_v26 = vsel %vm391_vm7, 1.0, %v1324_v14  ;;  %v1552_v20 = vld [vmem:[%s1714_s6 + $0x10] sm:$0xff]  ;;  %v1557_v21 = vld [vmem:[%s1714_s6 + $0x8] sm:$0xff]  ;;  %p1279_p13 = pneg %p1278_p12 }
  0x1f   : > { %vm289_vm8 = vcmp.eq.s32.totalorder %v279_v5, %v1429_v6  ;;  %vm290_vm9 = vcmp.eq.s32.totalorder %v280_v9, %v1429_v6  ;;  %vm322_vm10 = vcmp.eq.s32.totalorder %v279_v5, %v1431_v7  ;;  %vm323_vm11 = vcmp.eq.s32.totalorder %v280_v9, %v1431_v7 }
  0x20   : > { %v414_v27 = vadd.f32 %v1062_v25, %v381_v23  ;;  %v415_v28 = vadd.f32 %v1063_v26, %v382_v24  ;;  %v1036_v29 = vsel %vm289_vm8, 1.0, %v1324_v14  ;;  %v1037_v30 = vsel %vm290_vm9, 1.0, %v1324_v14  ;;  %v1564_v23 = vld [vmem:[%s1714_s6 + $0x18] sm:$0xff]  ;;  %v1183_v26 = vld [vmem:[%s1710_s2] sm:$0xff]  ;;  %p1284_p3 = pnand %p1283_p2, %p1279_p13 }
  0x21   : > { %v1044_v31 = vsel %vm322_vm10, 1.0, %v1324_v14  ;;  %v1045_v32 = vsel %vm323_vm11, 1.0, %v1324_v14  ;;  %vm355_vm12 = vcmp.eq.s32.totalorder %v279_v5, %v1433_v8  ;;  %vm356_vm13 = vcmp.eq.s32.totalorder %v280_v9, %v1433_v8 }
  0x22   : > { %v419_v33 = vpack.c.bf16 %v415_v28, %v414_v27  ;;  %v346_v34 = vadd.f32 %v1044_v31, %v1036_v29  ;;  %v347_v35 = vadd.f32 %v1045_v32, %v1037_v30  ;;  %v1052_v36 = vsel %vm355_vm12, 1.0, %v1324_v14  ;;  %v1171_v27 = vld [vmem:[%s1709_s1] sm:$0xff]  ;;  %v1184_v28 = vld [vmem:[%s1710_s2 + $0x8] sm:$0xff]  ;;  %v1173_v30 = vld [vmem:[%s1709_s1 + $0x10] sm:$0xff] }
  0x23   : > { %v1053_v37 = vsel %vm356_vm13, 1.0, %v1324_v14  ;;  %vm388_vm14 = vcmp.eq.s32.totalorder %v279_v5, %v1436_v10  ;;  %vm389_vm15 = vcmp.eq.s32.totalorder %v280_v9, %v1436_v10  ;;  %vm287_vm0 = vcmp.eq.s32.totalorder %v1439_v11, %v1429_v6  ;;  %v1172_v29 = vld [vmem:[%s1709_s1 + $0x8] sm:$0xff]  ;;  %v1174_v31 = vld [vmem:[%s1709_s1 + $0x18] sm:$0xff]  ;;  %v1175_v32 = vld [vmem:[%s1709_s1 + $0x20] sm:$0xff] }
  0x24   : > { %1192 = vmatpush.bf16.msra.mxu1 %v419_v33  ;;  %v379_v38 = vadd.f32 %v1052_v36, %v346_v34  ;;  %v380_v39 = vadd.f32 %v1053_v37, %v347_v35  ;;  %v1060_v40 = vsel %vm388_vm14, 1.0, %v1324_v14  ;;  %v1061_v41 = vsel %vm389_vm15, 1.0, %v1324_v14  ;;  %545 = vmatpush.bf16.msra.mxu0 %v419_v33  ;;  %v1181_v35 = vld [vmem:[%s1709_s1 + $0x50] sm:$0xff]  ;;  %v1182_v37 = vld [vmem:[%s1709_s1 + $0x58] sm:$0xff] }
  0x25   : > { %vm288_vm1 = vcmp.eq.s32.totalorder %v1442_v12, %v1429_v6  ;;  %v1034_v42 = vsel %vm287_vm0, 1.0, %v1324_v14  ;;  %vm320_vm2 = vcmp.eq.s32.totalorder %v1439_v11, %v1431_v7  ;;  %vm321_vm3 = vcmp.eq.s32.totalorder %v1442_v12, %v1431_v7  ;;  %1193 = vmatpush.bf16.msra.mxu2 %v419_v33  ;;  %v1176_v33 = vld [vmem:[%s1709_s1 + $0x28] sm:$0xff] }
  0x26   : > { %v412_v43 = vadd.f32 %v1060_v40, %v379_v38  ;;  %v413_v44 = vadd.f32 %v1061_v41, %v380_v39  ;;  %v1035_v45 = vsel %vm288_vm1, 1.0, %v1324_v14  ;;  %v1042_v46 = vsel %vm320_vm2, 1.0, %v1324_v14 }
  0x27   : > { %v1043_v47 = vsel %vm321_vm3, 1.0, %v1324_v14  ;;  %v344_v48 = vadd.f32 %v1042_v46, %v1034_v42  ;;  %vm353_vm4 = vcmp.eq.s32.totalorder %v1439_v11, %v1433_v8  ;;  %vm354_vm5 = vcmp.eq.s32.totalorder %v1442_v12, %v1433_v8 }
  0x28   : > { %v418_v49 = vpack.c.bf16 %v413_v44, %v412_v43  ;;  %v345_v50 = vadd.f32 %v1043_v47, %v1035_v45  ;;  %v1050_v51 = vsel %vm353_vm4, 1.0, %v1324_v14  ;;  %v1051_v52 = vsel %vm354_vm5, 1.0, %v1324_v14 }
  0x29   : > { %v377_v53 = vadd.f32 %v1050_v51, %v344_v48  ;;  %vm386_vm6 = vcmp.eq.s32.totalorder %v1439_v11, %v1436_v10  ;;  %vm387_vm7 = vcmp.eq.s32.totalorder %v1442_v12, %v1436_v10  ;;  %vm285_vm8 = vcmp.eq.s32.totalorder %v1421_v1, %v1429_v6 }
  0x2a   : > { %1194 = vmatpush.bf16.msra.mxu1 %v418_v49  ;;  %v378_v54 = vadd.f32 %v1051_v52, %v345_v50  ;;  %v1058_v55 = vsel %vm386_vm6, 1.0, %v1324_v14  ;;  %v1059_v56 = vsel %vm387_vm7, 1.0, %v1324_v14  ;;  %vm286_vm9 = vcmp.eq.s32.totalorder %v1445_v13, %v1429_v6  ;;  %546 = vmatpush.bf16.msra.mxu0 %v418_v49 }
  0x2b   : > { %v410_v57 = vadd.f32 %v1058_v55, %v377_v53  ;;  %v1032_v58 = vsel %vm285_vm8, 1.0, %v1324_v14  ;;  %v1033_v59 = vsel %vm286_vm9, 1.0, %v1324_v14  ;;  %vm318_vm10 = vcmp.eq.s32.totalorder %v1421_v1, %v1431_v7  ;;  %1195 = vmatpush.bf16.msra.mxu2 %v418_v49 }
  0x2c   : > { %v411_v60 = vadd.f32 %v1059_v56, %v378_v54  ;;  %vm319_vm11 = vcmp.eq.s32.totalorder %v1445_v13, %v1431_v7  ;;  %v1040_v61 = vsel %vm318_vm10, 1.0, %v1324_v14  ;;  %vm351_vm12 = vcmp.eq.s32.totalorder %v1421_v1, %v1433_v8 }
  0x2d   : > { %v1041_v62 = vsel %vm319_vm11, 1.0, %v1324_v14  ;;  %v342_v63 = vadd.f32 %v1040_v61, %v1032_v58  ;;  %vm352_vm13 = vcmp.eq.s32.totalorder %v1445_v13, %v1433_v8  ;;  %v1048_v0 = vsel %vm351_vm12, 1.0, %v1324_v14 }
  0x2e   : > { %v417_v2 = vpack.c.bf16 %v411_v60, %v410_v57  ;;  %v343_v3 = vadd.f32 %v1041_v62, %v1033_v59  ;;  %v1049_v4 = vsel %vm352_vm13, 1.0, %v1324_v14  ;;  %vm384_vm14 = vcmp.eq.s32.totalorder %v1421_v1, %v1436_v10  ;;  %v1178_v1 = vld [vmem:[%s1709_s1 + $0x38] sm:$0xff] }
  0x2f   : > { %v375_v5 = vadd.f32 %v1048_v0, %v342_v63  ;;  %vm385_vm15 = vcmp.eq.s32.totalorder %v1445_v13, %v1436_v10  ;;  %v1056_v6 = vsel %vm384_vm14, 1.0, %v1324_v14  ;;  %vm504_vm0 = vcmask 523264   ;;  %v1179_v10 = vld [vmem:[%s1709_s1 + $0x40] sm:$0xff]  ;;  %v1180_v13 = vld [vmem:[%s1709_s1 + $0x48] sm:$0xff] }
  0x30   : > { %1196 = vmatpush.bf16.msra.mxu1 %v417_v2  ;;  %v376_v7 = vadd.f32 %v1049_v4, %v343_v3  ;;  %v1057_v9 = vsel %vm385_vm15, 1.0, %v1324_v14  ;;  %547 = vmatpush.bf16.msra.mxu0 %v417_v2  ;;  %v1325_v17 = vmov 1   ;;  %vm656_vm1 = vcmask 261120   ;;  %v1185_v63 = vld [vmem:[%s1711_s3] sm:$0xff] }
  0x31   : > { %v408_v8 = vadd.f32 %v1056_v6, %v375_v5  ;;  %1197 = vmatpush.bf16.msra.mxu2 %v417_v2  ;;  %1246 = vset.pattern.permute.xlu0 %v1325_v17  ;;  %v1326_v41 = vmov 2  }
  0x32   : > { %v409_v11 = vadd.f32 %v1057_v9, %v376_v7  ;;  %1247 = vset.pattern.permute.xlu1 %v1325_v17  ;;  %638 = vperm.xlu0 %1246, %v1552_v20   ;;  %v733_v17 = vld [vmem:[%s1714_s6 + $0x38] sm:$0xff] }
  0x33   : > { %628 = vperm.xlu1 %1247, %v1546_v18   ;;  %1248 = vset.pattern.permute.xlu2 %v1326_v41  ;;  %v1186_v41 = vld [vmem:[%s1712_s4] sm:$0xff] }
  0x34   : > { %v416_v12 = vpack.c.bf16 %v409_v11, %v408_v8  ;;  %691 = vperm.xlu2 %1248, %v1546_v18  }
  0x36   : > { %1198 = vmatpush.bf16.msra.mxu1 %v416_v12  ;;  %548 = vmatpush.bf16.msra.mxu0 %v416_v12 }
  0x37   : > { %1199 = vmatpush.bf16.msra.mxu2 %v416_v12 }
  0x39   : > { %1118 = vmatmul.msk.bf16.vlgmr.msra.gmra.mxu1 %vm504_vm0, %v1177_v15  ;;  %1112 = vmatmul.msk.bf16.vlgmr.msra.gmra.mxu0 %vm504_vm0, %v1171_v27 }
  0x3a   : > { %643 = vperm.xlu0 %1246, %v1564_v23   ;;  %1122 = vmatmul.msk.bf16.vlgmr.msra.gmra.mxu2 %vm504_vm0, %v1181_v35 }
  0x3b   : > { %633 = vperm.xlu1 %1247, %v1557_v21  }
  0x3c   : > { %695 = vperm.xlu2 %1248, %v1557_v21  }
  0x49   : > { %1119 = vmatmul.msk.bf16.gmra.mxu1 %vm504_vm0, %v1178_v1  ;;  %1113 = vmatmul.msk.bf16.gmra.mxu0 %vm504_vm0, %v1172_v29 }
  0x4a   : > { %1123 = vmatmul.msk.bf16.gmra.mxu2 %vm504_vm0, %v1182_v37 }
  0x59   : > { %1120 = vmatmul.msk.bf16.gmra.mxu1 %vm504_vm0, %v1179_v10  ;;  %1114 = vmatmul.msk.bf16.gmra.mxu0 %vm504_vm0, %v1173_v30 }
  0x69   : > { %1121 = vmatmul.msk.bf16.gmra.mxu1 %vm504_vm0, %v1180_v13  ;;  %1115 = vmatmul.msk.bf16.gmra.mxu0 %vm504_vm0, %v1174_v31 }
  0x79   : > { %1116 = vmatmul.msk.bf16.gmra.mxu0 %vm504_vm0, %v1175_v32 }
  0x89   : > { %1117 = vmatmul.msk.bf16.gmra.mxu0 %vm504_vm0, %v1176_v33 }
  0xa4   : > { %v639_v45 = vpop.permute.xlu0 %638 }
  0xa5   : > { %v629_v44 = vpop.permute.xlu1 %628 }
  0xac   : > { %v644_v51 = vpop.permute.xlu0 %643 }
  0xad   : > { %v634_v48 = vpop.permute.xlu1 %633 }
  0xb6   : > { %v580_v14 = vpop.f32.mrf.mxu1  ;;  %v550_v42 = vpop.f32.mrf.mxu0 }
  0xbd   : > { %v600_v1 = vpop.f32.mrf.mxu2 }
  0xbe   : > { %v582_v16 = vpop.f32.mrf.mxu1  ;;  %v552_v46 = vpop.f32.mrf.mxu0 }
  0xbf   : > { %v624_v25 = vpack.c.bf16 %v582_v16, %v580_v14  ;;  %v692_v16 = vpop.permute.xlu2 %691 }
  0xc5   : > { %v602_v10 = vpop.f32.mrf.mxu2 }
  0xc6   : > { %v585_v19 = vpop.f32.mrf.mxu1  ;;  %v555_v50 = vpop.f32.mrf.mxu0 }
  0xc7   : > { %v696_v27 = vpop.permute.xlu2 %695 }
  0xcd   : > { %v605_v13 = vpop.f32.mrf.mxu2 }
  0xce   : > { %v587_v22 = vpop.f32.mrf.mxu1  ;;  %v557_v61 = vpop.f32.mrf.mxu0 }
  0xcf   : > { %v625_v24 = vpack.c.bf16 %v587_v22, %v585_v19  ;;  %v1327_v19 = vmov 0  }
  0xd0   : > { %1250 = vset.pattern.permute.xlu1 %v1327_v19  ;;  %1249 = vset.pattern.permute.xlu0 %v1327_v19 }
  0xd1   : > { %669 = vmatpush.bf16.msrb.mxu1 %v625_v24  ;;  %840 = vperm.xlu1 %1250, %v733_v17  }
  0xd2   : > { %1251 = vset.pattern.permute.xlu2 %v1327_v19 }
  0xd5   : > { %670 = vmatpush.bf16.msrb.mxu1 %v624_v25  ;;  %v607_v14 = vpop.f32.mrf.mxu2  ;;  %v731_v25 = vld [vmem:[%s1714_s6 + $0x28] sm:$0xff] }
  0xd6   : > { %v1598_v34 = vpop.f32.mrf.mxu1  ;;  %v560_v0 = vpop.f32.mrf.mxu0 }
  0xd8   : > { %1132 = vmatmul.msk.bf16.vlgmr.msrb.gmra.mxu1 %vm656_vm1, %v1183_v26 }
  0xd9   : > { %830 = vperm.xlu1 %1250, %v731_v25  }
  0xde   : > { %v1605_v36 = vpop.f32.mrf.mxu1  ;;  %v562_v2 = vpop.f32.mrf.mxu0 }
  0xe1   : > { %805 = vperm.xlu1 %1250, %v1546_v18  }
  0xe6   : > { %v1610_v38 = vpop.f32.mrf.mxu1  ;;  %v565_v3 = vpop.f32.mrf.mxu0 }
  0xe7   : > { %v610_v5 = vmul.f32 %v565_v3, %v550_v42  ;;  %v732_v42 = vld [vmem:[%s1714_s6 + $0x30] sm:$0xff] }
  0xe8   : > { %1133 = vmatmul.msk.bf16.gmra.mxu1 %vm656_vm1, %v1184_v28  ;;  %835 = vperm.xlu0 %1249, %v732_v42  }
  0xee   : > { %v1613_v39 = vpop.f32.mrf.mxu1  ;;  %v567_v4 = vpop.f32.mrf.mxu0 }
  0xef   : > { %v611_v6 = vmul.f32 %v567_v4, %v552_v46  ;;  %v1189_v46 = vld [vmem:[%s1712_s4 + $0x18] sm:$0xff] }
  0xf0   : > { %820 = vperm.xlu0 %1249, %v1564_v23  }
  0xf1   : > { %v722_v7 = vpack.c.bf16 %v611_v6, %v610_v5 }
  0xf6   : > { %v570_v9 = vpop.f32.mrf.mxu0 }
  0xf7   : > { %v612_v11 = vmul.f32 %v570_v9, %v555_v50 }
  0xfe   : > { %v572_v8 = vpop.f32.mrf.mxu0 }
  0xff   : > { %v613_v12 = vmul.f32 %v572_v8, %v557_v61 }
 0x101   : > { %v723_v15 = vpack.c.bf16 %v613_v12, %v612_v11 }
 0x106   : > { %v575_v24 = vpop.f32.mrf.mxu0 }
 0x107   : > { %v614_v33 = vmul.f32 %v575_v24, %v560_v0 }
 0x10e   : > { %v577_v30 = vpop.f32.mrf.mxu0 }
 0x10f   : > { %v615_v35 = vmul.f32 %v577_v30, %v562_v2  ;;  %v1330_v30 = vmov 5  }
 0x155   : > { %v672_v40 = vpop.f32.mrf.mxu1 }
 0x156   : > { %v673_v56 = vadd.f32 %v672_v40, %v629_v44  ;;  %v724_v40 = vpack.c.bf16 %v615_v35, %v614_v33  ;;  %v1187_v44 = vld [vmem:[%s1712_s4 + $0x8] sm:$0xff] }
 0x158   : > { %v682_v60 = vmax.f32 %v673_v56, 0.0 }
 0x15a   : > { %v836_v56 = vpop.permute.xlu0 %835 }
 0x15d   : > { %v674_v43 = vpop.f32.mrf.mxu1 }
 0x15e   : > { %v675_v54 = vadd.f32 %v674_v43, %v634_v48  ;;  %v730_v43 = vld [vmem:[%s1714_s6 + $0x20] sm:$0xff] }
 0x15f   : > { %825 = vperm.xlu2 %1251, %v730_v43  }
 0x160   : > { %v683_v58 = vmax.f32 %v675_v54, 0.0  ;;  %v841_v54 = vpop.permute.xlu1 %840 }
 0x162   : > { %v688_v62 = vpack.c.bf16 %v683_v58, %v682_v60  ;;  %v821_v5 = vpop.permute.xlu0 %820 }
 0x165   : > { %v677_v47 = vpop.f32.mrf.mxu1 }
 0x166   : > { %v678_v49 = vadd.f32 %v677_v47, %v639_v45  ;;  %v1188_v45 = vld [vmem:[%s1712_s4 + $0x10] sm:$0xff] }
 0x167   : > { %815 = vperm.xlu2 %1251, %v1552_v20  }
 0x168   : > { %v684_v55 = vmax.f32 %v678_v49, 0.0  ;;  %v831_v60 = vpop.permute.xlu1 %830 }
 0x16d   : > { %v679_v52 = vpop.f32.mrf.mxu1 }
 0x16e   : > { %v680_v53 = vadd.f32 %v679_v52, %v644_v51 }
 0x16f   : > { %810 = vperm.xlu2 %1251, %v1557_v21  }
 0x170   : > { %v685_v57 = vmax.f32 %v680_v53, 0.0 }
 0x172   : > { %v689_v59 = vpack.c.bf16 %v685_v57, %v684_v55 }
 0x174   : > { %712 = vmatpush.bf16.msrb.mxu2 %v689_v59 }
 0x178   : > { %713 = vmatpush.bf16.msrb.mxu2 %v688_v62 }
 0x17b   : > { %1138 = vmatmul.msk.bf16.vlgmr.msrb.gmra.mxu2 %vm656_vm1, %v1185_v63 }
 0x1b9   : > { %v826_v53 = vpop.permute.xlu2 %825 }
 0x1c1   : > { %v816_v58 = vpop.permute.xlu2 %815 }
 0x1fe   : > { %v715_v22 = vpop.f32.mrf.mxu2 }
 0x1ff   : > { %v716_v26 = vadd.f32 %v715_v22, %v692_v16  ;;  %v1328_v16 = vmov 3  }
 0x200   : > { %1253 = vset.pattern.permute.xlu1 %v1328_v16  ;;  %1252 = vset.pattern.permute.xlu0 %v1328_v16 }
 0x201   : > { %v720_v31 = vmax.f32 %v716_v26, 0.0  ;;  %872 = vperm.xlu1 %1253, %v1557_v21   ;;  %868 = vperm.xlu0 %1252, %v1546_v18  }
 0x202   : > { %1254 = vset.pattern.permute.xlu2 %v1328_v16 }
 0x203   : > { %876 = vperm.xlu2 %1254, %v1552_v20  }
 0x206   : > { %v717_v28 = vpop.f32.mrf.mxu2 }
 0x207   : > { %v718_v29 = vadd.f32 %v717_v28, %v696_v27  ;;  %v1329_v27 = vmov 4  }
 0x209   : > { %v721_v32 = vmax.f32 %v718_v29, 0.0  ;;  %880 = vperm.xlu1 %1253, %v1564_v23   ;;  %1256 = vset.pattern.permute.xlu0 %v1329_v27  ;;  %v1190_v29 = vld [vmem:[%s1713_s5] sm:$0xff] }
 0x20a   : > { %928 = vperm.xlu0 %1256, %v1557_v21   ;;  %v922_v21 = vld [vmem:[%s1714_s6] sm:$0x1] }
 0x20b   : > { %v725_v37 = vpack.c.bf16 %v721_v32, %v720_v31  ;;  %1255 = vset.pattern.permute.xlu2 %v1329_v27 }
 0x20c   : > { %924 = vperm.xlu2 %1255, %v1546_v18   ;;  %v1191_v18 = vld [vmem:[%s1713_s5 + $0x8] sm:$0xff] }
 0x20d   : > { %778 = vmatpush.bf16.msra.mxu3 %v725_v37 }
 0x211   : > { %779 = vmatpush.bf16.msra.mxu3 %v724_v40  ;;  %1257 = vset.pattern.permute.xlu1 %v1329_v27 }
 0x212   : > { %932 = vperm.xlu1 %1257, %v1552_v20   ;;  %1259 = vset.pattern.permute.xlu0 %v1330_v30 }
 0x214   : > { %936 = vperm.xlu2 %1255, %v1564_v23  }
 0x215   : > { %780 = vmatpush.bf16.msra.mxu3 %v723_v15 }
 0x219   : > { %781 = vmatpush.bf16.msra.mxu3 %v722_v7 }
 0x21a   : > { %1258 = vset.pattern.permute.xlu1 %v1330_v30 }
 0x21b   : > { %954 = vperm.xlu1 %1258, %v922_v21  }
 0x21c   : > { %1155 = vmatmul.msk.bf16.vlgmr.msra.gmra.mxu3 %vm504_vm0, %v1186_v41 }
 0x22c   : > { %1156 = vmatmul.msk.bf16.gmra.mxu3 %vm504_vm0, %v1187_v44 }
 0x23c   : > { %1157 = vmatmul.msk.bf16.gmra.mxu3 %vm504_vm0, %v1188_v45 }
 0x24c   : > { %1158 = vmatmul.msk.bf16.gmra.mxu3 %vm504_vm0, %v1189_v46 }
 0x273   : > { %v869_v35 = vpop.permute.xlu0 %868 }
 0x27c   : > { %v929_v45 = vpop.permute.xlu0 %928 }
 0x29f   : > { %v783_v47 = vpop.f32.mrf.mxu3 }
 0x2a7   : > { %v785_v48 = vpop.f32.mrf.mxu3 }
 0x2a8   : > { %v786_v11 = vadd.f32 %v785_v48, %v1605_v36 }
 0x2af   : > { %v788_v49 = vpop.f32.mrf.mxu3 }
 0x2b0   : > { %v789_v6 = vadd.f32 %v788_v49, %v1610_v38  ;;  %v806_v38 = vpop.permute.xlu1 %805 }
 0x2b7   : > { %v790_v50 = vpop.f32.mrf.mxu3 }
 0x2b8   : > { %v791_v2 = vadd.f32 %v790_v50, %v1613_v39  ;;  %v845_v39 = vadd.f32 %v816_v58, %v789_v6  ;;  %v873_v32 = vpop.permute.xlu1 %872 }
 0x2ba   : > { %v846_v12 = vadd.f32 %v821_v5, %v791_v2  ;;  %v853_v24 = vmax.f32 %v845_v39, 0.0 }
 0x2bc   : > { %v854_v36 = vmax.f32 %v846_v12, 0.0 }
 0x2be   : > { %v864_v26 = vpack.c.bf16 %v854_v36, %v853_v24 }
 0x2bf   : > { %v793_v51 = vpop.f32.mrf.mxu3 }
 0x2c0   : > { %v794_v62 = vadd.f32 %v793_v51, %v600_v1  ;;  %v784_v1 = vadd.f32 %v783_v47, %v1598_v34  ;;  %v881_v37 = vpop.permute.xlu1 %880 }
 0x2c2   : > { %v847_v7 = vadd.f32 %v826_v53, %v794_v62  ;;  %v843_v22 = vadd.f32 %v806_v38, %v784_v1 }
 0x2c4   : > { %v851_v34 = vmax.f32 %v843_v22, 0.0 }
 0x2c7   : > { %v795_v52 = vpop.f32.mrf.mxu3 }
 0x2c8   : > { %v796_v59 = vadd.f32 %v795_v52, %v602_v10  ;;  %v933_v48 = vpop.permute.xlu1 %932 }
 0x2ca   : > { %v848_v3 = vadd.f32 %v831_v60, %v796_v59 }
 0x2cc   : > { %v856_v15 = vmax.f32 %v848_v3, 0.0 }
 0x2cf   : > { %v798_v55 = vpop.f32.mrf.mxu3 }
 0x2d0   : > { %v799_v57 = vadd.f32 %v798_v55, %v605_v13  ;;  %v811_v13 = vpop.permute.xlu2 %810  ;;  %v955_v2 = vpop.permute.xlu1 %954 }
 0x2d1   : > { %v844_v17 = vadd.f32 %v811_v13, %v786_v11 }
 0x2d2   : > { %v849_v63 = vadd.f32 %v836_v56, %v799_v57 }
 0x2d3   : > { %v852_v25 = vmax.f32 %v844_v17, 0.0 }
 0x2d4   : > { %v857_v9 = vmax.f32 %v849_v63, 0.0 }
 0x2d5   : > { %v863_v28 = vpack.c.bf16 %v852_v25, %v851_v34 }
 0x2d7   : > { %v800_v61 = vpop.f32.mrf.mxu3 }
 0x2d8   : > { %v801_v0 = vadd.f32 %v800_v61, %v607_v14  ;;  %v855_v14 = vmax.f32 %v847_v7, 0.0  ;;  %v877_v20 = vpop.permute.xlu2 %876 }
 0x2da   : > { %v850_v4 = vadd.f32 %v841_v54, %v801_v0  ;;  %v865_v19 = vpack.c.bf16 %v856_v15, %v855_v14 }
 0x2dc   : > { %v858_v8 = vmax.f32 %v850_v4, 0.0 }
 0x2de   : > { %v866_v10 = vpack.c.bf16 %v858_v8, %v857_v9 }
 0x2e0   : > { %903 = vmatpush.bf16.msra.mxu2 %v866_v10  ;;  %v925_v44 = vpop.permute.xlu2 %924 }
 0x2e4   : > { %904 = vmatpush.bf16.msra.mxu2 %v865_v19 }
 0x2e8   : > { %905 = vmatpush.bf16.msra.mxu2 %v864_v26  ;;  %v937_v56 = vpop.permute.xlu2 %936 }
 0x2ec   : > { %906 = vmatpush.bf16.msra.mxu2 %v863_v28 }
 0x2ef   : > { %1167 = vmatmul.msk.bf16.vlgmr.msra.gmra.mxu2 %vm504_vm0, %v1190_v29 }
 0x2ff   : > { %1168 = vmatmul.msk.bf16.gmra.mxu2 %vm504_vm0, %v1191_v18 }
 0x372   : > { %v908_v31 = vpop.f32.mrf.mxu2 }
 0x373   : > { %v909_v41 = vadd.f32 %v908_v31, %v869_v35 }
 0x375   : > { %v918_v46 = vmax.f32 %v909_v41, 0.0 }
 0x377   : > { %v939_v51 = vmul.f32 %v925_v44, %v918_v46 }
 0x37a   : > { %v910_v33 = vpop.f32.mrf.mxu2 }
 0x37b   : > { %v911_v40 = vadd.f32 %v910_v33, %v873_v32 }
 0x37d   : > { %v919_v43 = vmax.f32 %v911_v40, 0.0 }
 0x37f   : > { %v940_v49 = vmul.f32 %v929_v45, %v919_v43 }
 0x381   : > { %v943_v54 = vadd.f32 %v940_v49, %v939_v51 }
 0x382   : > { %v913_v23 = vpop.f32.mrf.mxu2 }
 0x383   : > { %v914_v42 = vadd.f32 %v913_v23, %v877_v20 }
 0x385   : > { %v920_v47 = vmax.f32 %v914_v42, 0.0 }
 0x387   : > { %v941_v53 = vmul.f32 %v933_v48, %v920_v47 }
 0x389   : > { %v944_v57 = vadd.f32 %v943_v54, %v941_v53 }
 0x38a   : > { %v915_v50 = vpop.f32.mrf.mxu2 }
 0x38b   : > { %v916_v52 = vadd.f32 %v915_v50, %v881_v37 }
 0x38d   : > { %v921_v55 = vmax.f32 %v916_v52, 0.0 }
 0x38f   : > { %v942_v58 = vmul.f32 %v937_v56, %v921_v55 }
 0x391   : > { %v945_v59 = vadd.f32 %v944_v57, %v942_v58 }
 0x393   : > { %v946_v60 = vrot.slane %v945_v59, 4 }
 0x395   : > { %v947_v61 = vadd.f32 %v946_v60, %v945_v59 }
 0x397   : > { %v948_v62 = vrot.slane %v947_v61, 2 }
 0x399   : > { %v949_v63 = vadd.f32 %v948_v62, %v947_v61 }
 0x39b   : > { %v950_v0 = vrot.slane %v949_v63, 1 }
 0x39d   : > { %v951_v3 = vadd.f32 %v950_v0, %v949_v63 }
 0x39f   : > { %v957_v4 = vadd.f32 %v955_v2, %v951_v3 }
 0x3a1   : > { %958 = vst [vmem:[%s268_s9] sm:$0x1] %v957_v4 }
 0x3a2   : > { %1287 = shalt.err (!%p1284_p3)
}
 0x3a3   : > { %1200 = dma.vmem_to_hbm [thread:$0]  (%p1409_p5), %s971_s13, 16, %s973_s14, %s960_s15  }
 0x3a4 PF: > { %p1206_p4 = scmp.ge.s32.totalorder %s1322_s27, 2  ;;  %s984_s22 = sand.u32 1, %s1310_s24  }
 0x3a5   : > { %s985_s23 = scalar_lea.sflag [#allocation3], %s984_s22 }
 0x3a6   : > { %p1203_p7 = pnand %p1206_p4, %p1413_p6 }
 0x3a8   : > { %p1204_p8 = pneg %p1203_p7 }
 0x3aa   : > { %1305 = dma.done.wait (%p1204_p8), %s985_s23, 16  }
 0x3ab   : > { %1307 = vsyncadd (%p1204_p8), %s985_s23, 4294967280  ;;  %p17_p9 = scmp.ge.s32.totalorder %s1396_s30, 4   ;;  %s1718_s24 = smov %s1314_s25 }
 0x3ac   : > { %s1719_s25 = smov %s1318_s26  ;;  %s1720_s26 = smov %s1407_s10 }
 0x3ad   : > { %s1721_s27 = smov %s1396_s30  ;;  %19 = sbr.rel (!%p17_p9) target bundleno = 3 (0x3), region = 83 }
 0x3b2   :  { %990 = vsyncpa [#allocation3], 1 }
 0x3b3   :  { %992 = vsyncpa [#allocation3 + $0x1], 1 }

</bundles_post_ra>
